<compile_context>
chip_gen: v5e
topology: v5e:2x2
jax: 0.10.0
libtpu: 0.0.40
codegen_flags: <defaults>
</compile_context>

<pallas_src>
import functools

import jax
import jax.numpy as jnp
from jax.experimental import pallas as pl
from jax.experimental.pallas import tpu as pltpu


def _round_up(x: int, n: int) -> int:
    return ((x + n - 1) // n) * n


# --------------------------------------------------------------------------
# Primary kernel: all modality weights resident in VMEM, grid = (batch_tiles,)
# --------------------------------------------------------------------------
def _resident_kernel(fw_ref, x_ref, w1_ref, b1_ref, w2_ref, b2_ref, o_ref, *,
                     n_mod, mode, inv_n):
    acc = None
    for i in range(n_mod):  # static unrolled loop over modalities
        h = jnp.dot(x_ref[i], w1_ref[i], preferred_element_type=jnp.float32)
        h = jnp.maximum(h + b1_ref[i], 0.0)
        out = jnp.dot(h.astype(w2_ref.dtype), w2_ref[i],
                      preferred_element_type=jnp.float32)
        out = out + b2_ref[i]
        if mode == "wsum":
            out = fw_ref[i] * out
        if acc is None:
            acc = out
        elif mode == "max":
            acc = jnp.maximum(acc, out)
        else:
            acc = acc + out
    if mode == "mean":
        acc = acc * inv_n
    o_ref[...] = acc.astype(o_ref.dtype)


# --------------------------------------------------------------------------
# Fallback kernel: one modality per grid step, f32 VMEM accumulator,
# grid = (batch_tiles, n_mod) with modality axis "arbitrary".
# --------------------------------------------------------------------------
def _streamed_kernel(fw_ref, x_ref, w1_ref, b1_ref, w2_ref, b2_ref, o_ref,
                     acc_ref, *, mode, inv_n):
    m = pl.program_id(1)

    @pl.when(m == 0)
    def _():
        if mode == "max":
            acc_ref[...] = jnp.full(acc_ref.shape, -jnp.inf, acc_ref.dtype)
        else:
            acc_ref[...] = jnp.zeros_like(acc_ref)

    h = jnp.dot(x_ref[0], w1_ref[0], preferred_element_type=jnp.float32)
    h = jnp.maximum(h + b1_ref[0], 0.0)
    out = jnp.dot(h.astype(w2_ref.dtype), w2_ref[0],
                  preferred_element_type=jnp.float32)
    out = out + b2_ref[0]

    if mode == "wsum":
        acc_ref[...] += fw_ref[m] * out
    elif mode == "max":
        acc_ref[...] = jnp.maximum(acc_ref[...], out)
    else:  # sum / mean
        acc_ref[...] += out

    @pl.when(m == pl.num_programs(1) - 1)
    def _():
        res = acc_ref[...]
        if mode == "mean":
            res = res * inv_n
        o_ref[...] = res.astype(o_ref.dtype)


class LateFusion:
    """JAX/Pallas port of the PyTorch LateFusion module."""

    def __init__(self, feature_dims, output_dim, hidden_dim=256,
                 fusion_type="weighted_sum", *, key=None, dtype=jnp.float32,
                 vmem_budget_bytes=24 * 1024 * 1024):
        if fusion_type not in ("sum", "mean", "max", "weighted_sum"):
            raise ValueError(f"Unsupported fusion type: {fusion_type}")
        self.feature_dims = dict(feature_dims)
        self.modalities = list(self.feature_dims.keys())
        self.output_dim = output_dim
        self.hidden_dim = hidden_dim
        self.fusion_type = fusion_type
        self.dtype = dtype
        self.vmem_budget_bytes = vmem_budget_bytes

        n_mod = len(self.modalities)
        self.Dp = _round_up(max(self.feature_dims.values()), 128)
        self.Hp = _round_up(hidden_dim, 128)
        self.Np = _round_up(output_dim, 128)

        if key is None:
            key = jax.random.PRNGKey(42)

        # Raw (PyTorch-layout) params kept for reference checks; padded,
        # pre-transposed, modality-stacked copies are what the kernel consumes.
        self.params = {}
        w1_stack = jnp.zeros((n_mod, self.Dp, self.Hp), dtype)
        b1_stack = jnp.zeros((n_mod, 1, self.Hp), dtype)
        w2_stack = jnp.zeros((n_mod, self.Hp, self.Np), dtype)
        b2_stack = jnp.zeros((n_mod, 1, self.Np), dtype)

        for i, mod in enumerate(self.modalities):
            d = self.feature_dims[mod]
            key, k1, k2, k3, k4 = jax.random.split(key, 5)
            bound1 = 1.0 / (d ** 0.5)
            bound2 = 1.0 / (hidden_dim ** 0.5)
            w1 = jax.random.uniform(k1, (hidden_dim, d), dtype, -bound1, bound1)
            b1 = jax.random.uniform(k2, (hidden_dim,), dtype, -bound1, bound1)
            w2 = jax.random.uniform(k3, (output_dim, hidden_dim), dtype, -bound2, bound2)
            b2 = jax.random.uniform(k4, (output_dim,), dtype, -bound2, bound2)
            self.params[mod] = (w1, b1, w2, b2)
            w1_stack = w1_stack.at[i, :d, :hidden_dim].set(w1.T)
            b1_stack = b1_stack.at[i, 0, :hidden_dim].set(b1)
            w2_stack = w2_stack.at[i, :hidden_dim, :output_dim].set(w2.T)
            b2_stack = b2_stack.at[i, 0, :output_dim].set(b2)

        self.w1_stack = w1_stack
        self.b1_stack = b1_stack
        self.w2_stack = w2_stack
        self.b2_stack = b2_stack

        if fusion_type == "weighted_sum":
            self.modality_weights = jnp.ones((n_mod,), jnp.float32) / n_mod
        else:
            self.modality_weights = None

    # ------------------------------------------------------------------
    def _fusion_coeffs(self, idx):
        n = len(idx)
        if self.fusion_type == "weighted_sum":
            return jax.nn.softmax(self.modality_weights[jnp.asarray(idx)])
        # sum / mean / max: coefficients are not applied per-modality in-kernel
        return jnp.ones((n,), jnp.float32)

    def _mode(self):
        return {"weighted_sum": "wsum", "sum": "sum",
                "mean": "mean", "max": "max"}[self.fusion_type]

    def _per_modality_weight_bytes(self):
        itemsize = jnp.dtype(self.dtype).itemsize
        return (self.Dp * self.Hp + self.Hp + self.Hp * self.Np + self.Np) * itemsize

    def _pick_tb(self, batch, n_mod_in_block, resident_weight_bytes):
        """Largest sublane-aligned batch tile whose VMEM estimate fits budget."""
        itemsize = jnp.dtype(self.dtype).itemsize
        tb = min(512, _round_up(batch, 8))
        while True:
            est = (2 * resident_weight_bytes                       # dbl-buffered weights
                   + 2 * n_mod_in_block * tb * self.Dp * itemsize  # dbl-buffered acts
                   + 2 * tb * self.Np * itemsize                   # dbl-buffered output
                   + tb * self.Hp * 4 + tb * self.Np * 4)          # temporaries (f32)
            if est <= self.vmem_budget_bytes or tb <= 8:
                return tb, est
            tb = max(8, _round_up(tb // 2, 8))

    # ------------------------------------------------------------------
    def __call__(self, modality_features):
        avail = [m for m in self.modalities if m in modality_features]
        if not avail:
            raise ValueError("No modality features available for fusion")
        idx = [self.modalities.index(m) for m in avail]
        n_avail = len(avail)
        mode = self._mode()
        inv_n = 1.0 / n_avail

        batch = modality_features[avail[0]].shape[0]

        # Select weight stacks for the available modalities (no copy when all
        # modalities are present).
        if n_avail == len(self.modalities):
            w1s, b1s, w2s, b2s = (self.w1_stack, self.b1_stack,
                                  self.w2_stack, self.b2_stack)
        else:
            sel = jnp.asarray(idx)
            w1s, b1s = self.w1_stack[sel], self.b1_stack[sel]
            w2s, b2s = self.w2_stack[sel], self.b2_stack[sel]

        fw = self._fusion_coeffs(idx)

        # Decide between resident-weight and streamed-weight paths.
        wpm = self._per_modality_weight_bytes()
        tb_res, est_res = self._pick_tb(batch, n_avail, n_avail * wpm)
        use_resident = est_res <= self.vmem_budget_bytes
        if use_resident:
            tb = tb_res
        else:
            tb, _ = self._pick_tb(batch, 1, wpm)
        bp = _round_up(batch, tb)

        # Stack + zero-pad activations into [n_avail, bp, Dp] (glue in XLA).
        padded = []
        for mod in avail:
            xm = modality_features[mod].astype(self.dtype)
            padded.append(jnp.pad(
                xm, ((0, bp - xm.shape[0]), (0, self.Dp - xm.shape[1]))))
        x_stack = jnp.stack(padded, axis=0)

        cparams = pltpu.CompilerParams(
            dimension_semantics=(("parallel",) if use_resident
                                 else ("parallel", "arbitrary")),
            vmem_limit_bytes=32 * 1024 * 1024)

        if use_resident:
            kernel = functools.partial(_resident_kernel, n_mod=n_avail,
                                       mode=mode, inv_n=inv_n)
            out_padded = pl.pallas_call(
                kernel,
                out_shape=jax.ShapeDtypeStruct((bp, self.Np), self.dtype),
                grid_spec=pltpu.PrefetchScalarGridSpec(
                    num_scalar_prefetch=0,
                    grid=(bp // tb,),
                    in_specs=[
                        pl.BlockSpec(memory_space=pltpu.MemorySpace.SMEM),
                        pl.BlockSpec((n_avail, tb, self.Dp), lambda b: (0, b, 0)),
                        pl.BlockSpec((n_avail, self.Dp, self.Hp), lambda b: (0, 0, 0)),
                        pl.BlockSpec((n_avail, 1, self.Hp), lambda b: (0, 0, 0)),
                        pl.BlockSpec((n_avail, self.Hp, self.Np), lambda b: (0, 0, 0)),
                        pl.BlockSpec((n_avail, 1, self.Np), lambda b: (0, 0, 0)),
                    ],
                    out_specs=pl.BlockSpec((tb, self.Np), lambda b: (b, 0)),
                ),
                compiler_params=cparams,
            )(fw, x_stack, w1s, b1s, w2s, b2s)
        else:
            kernel = functools.partial(_streamed_kernel, mode=mode, inv_n=inv_n)
            out_padded = pl.pallas_call(
                kernel,
                out_shape=jax.ShapeDtypeStruct((bp, self.Np), self.dtype),
                grid_spec=pltpu.PrefetchScalarGridSpec(
                    num_scalar_prefetch=0,
                    grid=(bp // tb, n_avail),
                    in_specs=[
                        pl.BlockSpec(memory_space=pltpu.MemorySpace.SMEM),
                        pl.BlockSpec((1, tb, self.Dp), lambda b, m: (m, b, 0)),
                        pl.BlockSpec((1, self.Dp, self.Hp), lambda b, m: (m, 0, 0)),
                        pl.BlockSpec((1, 1, self.Hp), lambda b, m: (m, 0, 0)),
                        pl.BlockSpec((1, self.Hp, self.Np), lambda b, m: (m, 0, 0)),
                        pl.BlockSpec((1, 1, self.Np), lambda b, m: (m, 0, 0)),
                    ],
                    out_specs=pl.BlockSpec((tb, self.Np), lambda b, m: (b, 0)),
                    scratch_shapes=[pltpu.VMEM((tb, self.Np), jnp.float32)],
                ),
                compiler_params=cparams,
            )(fw, x_stack, w1s, b1s, w2s, b2s)

        return out_padded[:batch, :self.output_dim]


# --------------------------------------------------------------------------
if __name__ == "__main__":
    key = jax.random.PRNGKey(0)
    k1, k2, k3, kp = jax.random.split(key, 4)

    batch = 8
    feature_dims = {"vision": 32, "text": 48, "audio": 48}
    hidden_dim = 128
    output_dim = 64          # not a multiple of 128 -> exercises output padding

    feats = {
        "vision": jax.random.normal(k1, (batch, feature_dims["vision"]), jnp.float32),
        "text":   jax.random.normal(k2, (batch, feature_dims["text"]),   jnp.float32),
        "audio":  jax.random.normal(k3, (batch, feature_dims["audio"]),  jnp.float32),
    }

    def branch_outs(fusion, present):
        outs = {}
        for mod in fusion.modalities:
            if mod not in present:
                continue
            w1, b1, w2, b2 = fusion.params[mod]
            h = jnp.maximum(present[mod] @ w1.T + b1, 0.0)
            outs[mod] = h @ w2.T + b2
        return outs

    # 1) weighted_sum, all modalities (resident-weight path).
    f_ws = LateFusion(feature_dims, output_dim, hidden_dim, "weighted_sum", key=kp)
    out = jax.block_until_ready(f_ws(feats))
    assert out.shape == (batch, output_dim)
    bo = branch_outs(f_ws, feats)
    w = jax.nn.softmax(f_ws.modality_weights)
    ref = sum(w[i] * bo[m] for i, m in enumerate(f_ws.modalities))
    assert jnp.allclose(out, ref, atol=1e-4, rtol=1e-4), \
        float(jnp.max(jnp.abs(out - ref)))

    # 2) max fusion, all modalities.
    f_max = LateFusion(feature_dims, output_dim, hidden_dim, "max", key=kp)
    out_max = jax.block_until_ready(f_max(feats))
    bo = branch_outs(f_max, feats)
    ref_max = jnp.max(jnp.stack([bo[m] for m in f_max.modalities], 0), axis=0)
    assert jnp.allclose(out_max, ref_max, atol=1e-4, rtol=1e-4), \
        float(jnp.max(jnp.abs(out_max - ref_max)))

    # 3) mean fusion with a missing modality (subset selection path).
    f_mean = LateFusion(feature_dims, output_dim, hidden_dim, "mean", key=kp)
    feats_sub = {"vision": feats["vision"], "audio": feats["audio"]}
    out_mean = jax.block_until_ready(f_mean(feats_sub))
    bo = branch_outs(f_mean, feats_sub)
    ref_mean = (bo["vision"] + bo["audio"]) / 2.0
    assert jnp.allclose(out_mean, ref_mean, atol=1e-4, rtol=1e-4), \
        float(jnp.max(jnp.abs(out_mean - ref_mean)))

    # 4) sum fusion, forcing the streamed-weight fallback kernel.
    f_sum = LateFusion(feature_dims, output_dim, hidden_dim, "sum", key=kp,
                       vmem_budget_bytes=1)
    out_sum = jax.block_until_ready(f_sum(feats))
    bo = branch_outs(f_sum, feats)
    ref_sum = sum(bo[m] for m in f_sum.modalities)
    assert jnp.allclose(out_sum, ref_sum, atol=1e-4, rtol=1e-4), \
        float(jnp.max(jnp.abs(out_sum - ref_sum)))

    print("KERNEL_OK")
</pallas_src>

<mosaic_0001>
module attributes {stable_mosaic.version = 11 : i64} {
  func.func @_resident_kernel(%arg0: i32, %arg1: memref<3xf32, #tpu.memory_space<smem>>, %arg2: memref<3x8x128xf32, #tpu.memory_space<vmem>>, %arg3: memref<3x128x128xf32, #tpu.memory_space<vmem>>, %arg4: memref<3x1x128xf32, #tpu.memory_space<vmem>>, %arg5: memref<3x128x128xf32, #tpu.memory_space<vmem>>, %arg6: memref<3x1x128xf32, #tpu.memory_space<vmem>>, %arg7: memref<8x128xf32, #tpu.memory_space<vmem>>) attributes {dimension_semantics = [#tpu.dimension_semantics<parallel>], iteration_bounds = array<i64: 1>, scalar_prefetch = 0 : i64, scratch_operands = 0 : i64, tpu.core_type = #tpu.core_type<tc>, window_params = [{transform_indices = @transform_0, window_bounds = array<i64: 3>}, {transform_indices = @transform_1, window_bounds = array<i64: 3, 8, 128>}, {pipeline_mode = #tpu.pipeline_mode<synchronous>, transform_indices = @transform_2, window_bounds = array<i64: 3, 128, 128>}, {pipeline_mode = #tpu.pipeline_mode<synchronous>, transform_indices = @transform_3, window_bounds = array<i64: 3, 1, 128>}, {pipeline_mode = #tpu.pipeline_mode<synchronous>, transform_indices = @transform_4, window_bounds = array<i64: 3, 128, 128>}, {pipeline_mode = #tpu.pipeline_mode<synchronous>, transform_indices = @transform_5, window_bounds = array<i64: 3, 1, 128>}, {transform_indices = @transform_6, window_bounds = array<i64: 8, 128>}]} {
    %c0 = arith.constant 0 : index
    %c0_0 = arith.constant 0 : index
    %c0_1 = arith.constant 0 : index
    %0 = vector.load %arg2[%c0, %c0_0, %c0_1] : memref<3x8x128xf32, #tpu.memory_space<vmem>>, vector<1x8x128xf32>
    %1 = vector.shape_cast %0 : vector<1x8x128xf32> to vector<8x128xf32>
    %c0_2 = arith.constant 0 : index
    %c0_3 = arith.constant 0 : index
    %c0_4 = arith.constant 0 : index
    %2 = vector.load %arg3[%c0_2, %c0_3, %c0_4] : memref<3x128x128xf32, #tpu.memory_space<vmem>>, vector<1x128x128xf32>
    %3 = vector.shape_cast %2 : vector<1x128x128xf32> to vector<128x128xf32>
    %cst = arith.constant dense<0.000000e+00> : vector<8x128xf32>
    %4 = tpu.matmul %1, %3, %cst {dimension_numbers = #tpu.dot_dimension_numbers<[1], [0], [0], [1], [0, 0, 1, 1], [], []>} : vector<8x128xf32>, vector<128x128xf32>, vector<8x128xf32> -> vector<8x128xf32>
    %c0_5 = arith.constant 0 : index
    %c0_6 = arith.constant 0 : index
    %c0_7 = arith.constant 0 : index
    %5 = vector.load %arg4[%c0_5, %c0_6, %c0_7] : memref<3x1x128xf32, #tpu.memory_space<vmem>>, vector<1x1x128xf32>
    %6 = vector.shape_cast %5 : vector<1x1x128xf32> to vector<1x128xf32>
    %7 = vector.broadcast %6 : vector<1x128xf32> to vector<8x128xf32>
    %8 = arith.addf %4, %7 : vector<8x128xf32>
    %cst_8 = arith.constant 0.000000e+00 : f32
    %9 = vector.broadcast %cst_8 : f32 to vector<8x128xf32>
    %10 = arith.maximumf %8, %9 : vector<8x128xf32>
    %c0_9 = arith.constant 0 : index
    %c0_10 = arith.constant 0 : index
    %c0_11 = arith.constant 0 : index
    %11 = vector.load %arg5[%c0_9, %c0_10, %c0_11] : memref<3x128x128xf32, #tpu.memory_space<vmem>>, vector<1x128x128xf32>
    %12 = vector.shape_cast %11 : vector<1x128x128xf32> to vector<128x128xf32>
    %cst_12 = arith.constant dense<0.000000e+00> : vector<8x128xf32>
    %13 = tpu.matmul %10, %12, %cst_12 {dimension_numbers = #tpu.dot_dimension_numbers<[1], [0], [0], [1], [0, 0, 1, 1], [], []>} : vector<8x128xf32>, vector<128x128xf32>, vector<8x128xf32> -> vector<8x128xf32>
    %c0_13 = arith.constant 0 : index
    %c0_14 = arith.constant 0 : index
    %c0_15 = arith.constant 0 : index
    %14 = vector.load %arg6[%c0_13, %c0_14, %c0_15] : memref<3x1x128xf32, #tpu.memory_space<vmem>>, vector<1x1x128xf32>
    %15 = vector.shape_cast %14 : vector<1x1x128xf32> to vector<1x128xf32>
    %16 = vector.broadcast %15 : vector<1x128xf32> to vector<8x128xf32>
    %17 = arith.addf %13, %16 : vector<8x128xf32>
    %c0_16 = arith.constant 0 : index
    %18 = memref.load %arg1[%c0_16] : memref<3xf32, #tpu.memory_space<smem>>
    %19 = vector.broadcast %18 : f32 to vector<8x128xf32>
    %20 = arith.mulf %19, %17 : vector<8x128xf32>
    %c1 = arith.constant 1 : index
    %c0_17 = arith.constant 0 : index
    %c0_18 = arith.constant 0 : index
    %21 = vector.load %arg2[%c1, %c0_17, %c0_18] : memref<3x8x128xf32, #tpu.memory_space<vmem>>, vector<1x8x128xf32>
    %22 = vector.shape_cast %21 : vector<1x8x128xf32> to vector<8x128xf32>
    %c1_19 = arith.constant 1 : index
    %c0_20 = arith.constant 0 : index
    %c0_21 = arith.constant 0 : index
    %23 = vector.load %arg3[%c1_19, %c0_20, %c0_21] : memref<3x128x128xf32, #tpu.memory_space<vmem>>, vector<1x128x128xf32>
    %24 = vector.shape_cast %23 : vector<1x128x128xf32> to vector<128x128xf32>
    %cst_22 = arith.constant dense<0.000000e+00> : vector<8x128xf32>
    %25 = tpu.matmul %22, %24, %cst_22 {dimension_numbers = #tpu.dot_dimension_numbers<[1], [0], [0], [1], [0, 0, 1, 1], [], []>} : vector<8x128xf32>, vector<128x128xf32>, vector<8x128xf32> -> vector<8x128xf32>
    %c1_23 = arith.constant 1 : index
    %c0_24 = arith.constant 0 : index
    %c0_25 = arith.constant 0 : index
    %26 = vector.load %arg4[%c1_23, %c0_24, %c0_25] : memref<3x1x128xf32, #tpu.memory_space<vmem>>, vector<1x1x128xf32>
    %27 = vector.shape_cast %26 : vector<1x1x128xf32> to vector<1x128xf32>
    %28 = vector.broadcast %27 : vector<1x128xf32> to vector<8x128xf32>
    %29 = arith.addf %25, %28 : vector<8x128xf32>
    %cst_26 = arith.constant 0.000000e+00 : f32
    %30 = vector.broadcast %cst_26 : f32 to vector<8x128xf32>
    %31 = arith.maximumf %29, %30 : vector<8x128xf32>
    %c1_27 = arith.constant 1 : index
    %c0_28 = arith.constant 0 : index
    %c0_29 = arith.constant 0 : index
    %32 = vector.load %arg5[%c1_27, %c0_28, %c0_29] : memref<3x128x128xf32, #tpu.memory_space<vmem>>, vector<1x128x128xf32>
    %33 = vector.shape_cast %32 : vector<1x128x128xf32> to vector<128x128xf32>
    %cst_30 = arith.constant dense<0.000000e+00> : vector<8x128xf32>
    %34 = tpu.matmul %31, %33, %cst_30 {dimension_numbers = #tpu.dot_dimension_numbers<[1], [0], [0], [1], [0, 0, 1, 1], [], []>} : vector<8x128xf32>, vector<128x128xf32>, vector<8x128xf32> -> vector<8x128xf32>
    %c1_31 = arith.constant 1 : index
    %c0_32 = arith.constant 0 : index
    %c0_33 = arith.constant 0 : index
    %35 = vector.load %arg6[%c1_31, %c0_32, %c0_33] : memref<3x1x128xf32, #tpu.memory_space<vmem>>, vector<1x1x128xf32>
    %36 = vector.shape_cast %35 : vector<1x1x128xf32> to vector<1x128xf32>
    %37 = vector.broadcast %36 : vector<1x128xf32> to vector<8x128xf32>
    %38 = arith.addf %34, %37 : vector<8x128xf32>
    %c1_34 = arith.constant 1 : index
    %39 = memref.load %arg1[%c1_34] : memref<3xf32, #tpu.memory_space<smem>>
    %40 = vector.broadcast %39 : f32 to vector<8x128xf32>
    %41 = arith.mulf %40, %38 : vector<8x128xf32>
    %42 = arith.addf %20, %41 : vector<8x128xf32>
    %c2 = arith.constant 2 : index
    %c0_35 = arith.constant 0 : index
    %c0_36 = arith.constant 0 : index
    %43 = vector.load %arg2[%c2, %c0_35, %c0_36] : memref<3x8x128xf32, #tpu.memory_space<vmem>>, vector<1x8x128xf32>
    %44 = vector.shape_cast %43 : vector<1x8x128xf32> to vector<8x128xf32>
    %c2_37 = arith.constant 2 : index
    %c0_38 = arith.constant 0 : index
    %c0_39 = arith.constant 0 : index
    %45 = vector.load %arg3[%c2_37, %c0_38, %c0_39] : memref<3x128x128xf32, #tpu.memory_space<vmem>>, vector<1x128x128xf32>
    %46 = vector.shape_cast %45 : vector<1x128x128xf32> to vector<128x128xf32>
    %cst_40 = arith.constant dense<0.000000e+00> : vector<8x128xf32>
    %47 = tpu.matmul %44, %46, %cst_40 {dimension_numbers = #tpu.dot_dimension_numbers<[1], [0], [0], [1], [0, 0, 1, 1], [], []>} : vector<8x128xf32>, vector<128x128xf32>, vector<8x128xf32> -> vector<8x128xf32>
    %c2_41 = arith.constant 2 : index
    %c0_42 = arith.constant 0 : index
    %c0_43 = arith.constant 0 : index
    %48 = vector.load %arg4[%c2_41, %c0_42, %c0_43] : memref<3x1x128xf32, #tpu.memory_space<vmem>>, vector<1x1x128xf32>
    %49 = vector.shape_cast %48 : vector<1x1x128xf32> to vector<1x128xf32>
    %50 = vector.broadcast %49 : vector<1x128xf32> to vector<8x128xf32>
    %51 = arith.addf %47, %50 : vector<8x128xf32>
    %cst_44 = arith.constant 0.000000e+00 : f32
    %52 = vector.broadcast %cst_44 : f32 to vector<8x128xf32>
    %53 = arith.maximumf %51, %52 : vector<8x128xf32>
    %c2_45 = arith.constant 2 : index
    %c0_46 = arith.constant 0 : index
    %c0_47 = arith.constant 0 : index
    %54 = vector.load %arg5[%c2_45, %c0_46, %c0_47] : memref<3x128x128xf32, #tpu.memory_space<vmem>>, vector<1x128x128xf32>
    %55 = vector.shape_cast %54 : vector<1x128x128xf32> to vector<128x128xf32>
    %cst_48 = arith.constant dense<0.000000e+00> : vector<8x128xf32>
    %56 = tpu.matmul %53, %55, %cst_48 {dimension_numbers = #tpu.dot_dimension_numbers<[1], [0], [0], [1], [0, 0, 1, 1], [], []>} : vector<8x128xf32>, vector<128x128xf32>, vector<8x128xf32> -> vector<8x128xf32>
    %c2_49 = arith.constant 2 : index
    %c0_50 = arith.constant 0 : index
    %c0_51 = arith.constant 0 : index
    %57 = vector.load %arg6[%c2_49, %c0_50, %c0_51] : memref<3x1x128xf32, #tpu.memory_space<vmem>>, vector<1x1x128xf32>
    %58 = vector.shape_cast %57 : vector<1x1x128xf32> to vector<1x128xf32>
    %59 = vector.broadcast %58 : vector<1x128xf32> to vector<8x128xf32>
    %60 = arith.addf %56, %59 : vector<8x128xf32>
    %c2_52 = arith.constant 2 : index
    %61 = memref.load %arg1[%c2_52] : memref<3xf32, #tpu.memory_space<smem>>
    %62 = vector.broadcast %61 : f32 to vector<8x128xf32>
    %63 = arith.mulf %62, %60 : vector<8x128xf32>
    %64 = arith.addf %42, %63 : vector<8x128xf32>
    %c0_53 = arith.constant 0 : index
    %c0_54 = arith.constant 0 : index
    %65 = vector.load %arg7[%c0_53, %c0_54] : memref<8x128xf32, #tpu.memory_space<vmem>>, vector<8x128xf32>
    tpu.vector_store %arg7[%c0_53, %c0_54], %64 {strides = array<i32>} : memref<8x128xf32, #tpu.memory_space<vmem>>, vector<8x128xf32>,
    return
  }
  func.func @transform_0(%arg0: i32) -> i32 {
    %c0_i32 = arith.constant 0 : i32
    %c0_i32_0 = arith.constant 0 : i32
    return %c0_i32 : i32
  }
  func.func @transform_1(%arg0: i32) -> (i32, i32, i32) {
    %c0_i32 = arith.constant 0 : i32
    %c0_i32_0 = arith.constant 0 : i32
    %c0_i32_1 = arith.constant 0 : i32
    return %c0_i32, %arg0, %c0_i32_0 : i32, i32, i32
  }
  func.func @transform_2(%arg0: i32) -> (i32, i32, i32) {
    %c0_i32 = arith.constant 0 : i32
    %c0_i32_0 = arith.constant 0 : i32
    %c0_i32_1 = arith.constant 0 : i32
    %c0_i32_2 = arith.constant 0 : i32
    return %c0_i32, %c0_i32_0, %c0_i32_1 : i32, i32, i32
  }
  func.func @transform_3(%arg0: i32) -> (i32, i32, i32) {
    %c0_i32 = arith.constant 0 : i32
    %c0_i32_0 = arith.constant 0 : i32
    %c0_i32_1 = arith.constant 0 : i32
    %c0_i32_2 = arith.constant 0 : i32
    return %c0_i32, %c0_i32_0, %c0_i32_1 : i32, i32, i32
  }
  func.func @transform_4(%arg0: i32) -> (i32, i32, i32) {
    %c0_i32 = arith.constant 0 : i32
    %c0_i32_0 = arith.constant 0 : i32
    %c0_i32_1 = arith.constant 0 : i32
    %c0_i32_2 = arith.constant 0 : i32
    return %c0_i32, %c0_i32_0, %c0_i32_1 : i32, i32, i32
  }
  func.func @transform_5(%arg0: i32) -> (i32, i32, i32) {
    %c0_i32 = arith.constant 0 : i32
    %c0_i32_0 = arith.constant 0 : i32
    %c0_i32_1 = arith.constant 0 : i32
    %c0_i32_2 = arith.constant 0 : i32
    return %c0_i32, %c0_i32_0, %c0_i32_1 : i32, i32, i32
  }
  func.func @transform_6(%arg0: i32) -> (i32, i32) {
    %c0_i32 = arith.constant 0 : i32
    %c0_i32_0 = arith.constant 0 : i32
    return %arg0, %c0_i32 : i32, i32
  }
}

</mosaic_0001>

<bundles_post_ra>
// kernel: tpu_custom_call.1
= control target key start
LH: loop header
LB: loop body
LE: loop exit
PB: predicated region body
PF: predicated region fallthrough
CT: control target
= control target key end

     0   :  { %11 = vsyncpa [#allocation5], 0  ;;  %s622_s0 = inlined_call_operand.hbm [shape: f32[3], index: 0, kind: input, shape index: {}]   ;;  %s623_s1 = inlined_call_operand.hbm [shape: f32[3,8,128], index: 1, kind: input, shape index: {}]   ;;  %s624_s2 = inlined_call_operand.hbm [shape: f32[3,128,128], index: 2, kind: input, shape index: {}]   ;;  %s625_s3 = inlined_call_operand.hbm [shape: f32[3,1,128], index: 3, kind: input, shape index: {}]   ;;  %s626_s4 = inlined_call_operand.hbm [shape: f32[3,128,128], index: 4, kind: input, shape index: {}]   ;;  %s627_s5 = inlined_call_operand.vmem [shape: f32[3,1,128], index: 5, kind: input, shape index: {}]   ;;  %s628_s6 = inlined_call_operand.hbm [shape: f32[8,128], index: 6, kind: output, shape index: {}]  }
   0x1   :  { %12 = vsyncpa [#allocation3], 0 }
   0x2   :  { %13 = vsyncpa [#allocation8], 0 }
   0x3   :  { %14 = vsyncpa [#allocation11], 0 }
   0x4   :  { %15 = vsyncpa [#allocation4], 0  ;;  %s42_s23 = sshll.u32 %s624_s2, 4  ;;  %s550_s24 = smov [#allocation7]   ;;  %s43_s23 = int_to_ptr.hbm [resolvable:$true] %s42_s23 }
   0x5   :  { %s44_s25 = sshll.u32 %s550_s24, 4  ;;  %s21_s28 = sshll.u32 %s622_s0, 4  ;;  %s45_s25 = int_to_ptr.vmem [resolvable:$true] %s44_s25  ;;  %s22_s28 = int_to_ptr.hbm [resolvable:$true] %s21_s28 }
   0x6   :  { %s551_s29 = smov 128   ;;  %s552_s30 = smov 8  }
   0x7   :  { %50 = dma.hbm_to_vmem [thread:$0]  %s43_s23, 6144, %s45_s25, [#allocation8], %s551_s29, %s551_s29, %s552_s30  }
   0x8   :  { %s553_s7 = smov [#allocation2]   ;;  %s29_s10 = sshll.u32 %s623_s1, 4  ;;  %s30_s10 = int_to_ptr.hbm [resolvable:$true] %s29_s10 }
   0x9   :  { %24 = dma.hbm_to_smem %s22_s28, 16, %s553_s7, [#allocation5]  }
   0xa   :  { %s554_s2 = smov [#allocation6]   ;;  %s55_s14 = sshll.u32 %s625_s3, 4  ;;  %s56_s14 = int_to_ptr.hbm [resolvable:$true] %s55_s14 }
   0xb   :  { %s31_s11 = sshll.u32 %s554_s2, 4  ;;  %s555_s0 = smov [#allocation9]   ;;  %s32_s11 = int_to_ptr.vmem [resolvable:$true] %s31_s11 }
   0xc   :  { %37 = dma.hbm_to_vmem [thread:$0]  %s30_s10, 384, %s32_s11, [#allocation3], %s551_s29, %s551_s29, %s552_s30  }
   0xd   :  { %s57_s15 = sshll.u32 %s555_s0, 4  ;;  %s556_s16 = smov 16   ;;  %s58_s15 = int_to_ptr.vmem [resolvable:$true] %s57_s15 }
   0xe   :  { %s557_s17 = smov 1   ;;  %s68_s1 = sshll.u32 %s626_s4, 4  ;;  %s69_s1 = int_to_ptr.hbm [resolvable:$true] %s68_s1 }
   0xf   :  { %63 = dma.hbm_to_vmem [thread:$0]  %s56_s14, 48, %s58_s15, [#allocation8], %s556_s16, %s556_s16, %s557_s17  }
  0x10   :  { %s558_s20 = smov [#allocation10]  }
  0x11   :  { %s70_s21 = sshll.u32 %s558_s20, 4  ;;  %s71_s21 = int_to_ptr.vmem [resolvable:$true] %s70_s21 }
  0x12   :  { %76 = dma.hbm_to_vmem [thread:$0]  %s69_s1, 6144, %s71_s21, [#allocation11], %s551_s29, %s551_s29, %s552_s30  }
  0x13   :  { %540 = dma.done.wait [#allocation5], 16  }
  0x14   :  { %541 = vsyncadd [#allocation5], 4294967280 }
  0x15   :  { %542 = dma.done.wait [#allocation3], 384  }
  0x16   :  { %543 = vsyncadd [#allocation3], 4294966912 }
  0x17   :  { %544 = dma.done.wait [#allocation8], 6192  }
  0x18   :  { %545 = vsyncadd [#allocation8], 4294961104 }
  0x19   :  { %546 = dma.done.wait [#allocation11], 6144  }
  0x1a   :  { %547 = vsyncadd [#allocation11], 4294961152 }
  0x1b   :  { %99 = sfence }
  0x1c   :  { %v116_v0 = vld [vmem:[#allocation7 + $0x78] sm:$0xff]  ;;  %v115_v1 = vld [vmem:[#allocation7 + $0x70] sm:$0xff]  ;;  %v114_v2 = vld [vmem:[#allocation7 + $0x68] sm:$0xff]  ;;  %s182_s3 = sld [smem:[#allocation2]]  ;;  %s559_s29 = smov [#allocation12]  }
  0x1d   :  { %121 = vmatpush.msra.mxu0 %v116_v0  ;;  %v203_v3 = vld [vmem:[#allocation7 + $0xf8] sm:$0xff]  ;;  %v202_v4 = vld [vmem:[#allocation7 + $0xf0] sm:$0xff]  ;;  %v113_v5 = vld [vmem:[#allocation7 + $0x60] sm:$0xff]  ;;  %s389_s4 = sld [smem:[#allocation2 + $0x1]]  ;;  %s373_s30 = sshll.u32 %s559_s29, 4  ;;  %s374_s30 = int_to_ptr.vmem [resolvable:$true] %s373_s30 }
  0x1e   :  { %209 = vmatpush.msra.mxu2 %v203_v3  ;;  %v201_v6 = vld [vmem:[#allocation7 + $0xe8] sm:$0xff]  ;;  %v112_v7 = vld [vmem:[#allocation7 + $0x58] sm:$0xff]  ;;  %v200_v8 = vld [vmem:[#allocation7 + $0xe0] sm:$0xff]  ;;  %s391_s26 = sld [smem:[#allocation2 + $0x2]]  ;;  %s375_s9 = sshll.u32 %s628_s6, 4  ;;  %s376_s9 = int_to_ptr.hbm [resolvable:$true] %s375_s9 }
  0x1f   :  { %122 = vmatpush.msra.mxu0 %v115_v1  ;;  %v111_v9 = vld [vmem:[#allocation7 + $0x50] sm:$0xff]  ;;  %v199_v10 = vld [vmem:[#allocation7 + $0xd8] sm:$0xff]  ;;  %v110_v11 = vld [vmem:[#allocation7 + $0x48] sm:$0xff] }
  0x20   :  { %210 = vmatpush.msra.mxu2 %v202_v4  ;;  %v198_v12 = vld [vmem:[#allocation7 + $0xd0] sm:$0xff]  ;;  %v109_v13 = vld [vmem:[#allocation7 + $0x40] sm:$0xff]  ;;  %v197_v14 = vld [vmem:[#allocation7 + $0xc8] sm:$0xff] }
  0x21   :  { %123 = vmatpush.msra.mxu0 %v114_v2  ;;  %v108_v15 = vld [vmem:[#allocation7 + $0x38] sm:$0xff]  ;;  %v196_v16 = vld [vmem:[#allocation7 + $0xc0] sm:$0xff]  ;;  %v107_v17 = vld [vmem:[#allocation7 + $0x30] sm:$0xff] }
  0x22   :  { %211 = vmatpush.msra.mxu2 %v201_v6  ;;  %v195_v18 = vld [vmem:[#allocation7 + $0xb8] sm:$0xff]  ;;  %v106_v19 = vld [vmem:[#allocation7 + $0x28] sm:$0xff]  ;;  %v194_v20 = vld [vmem:[#allocation7 + $0xb0] sm:$0xff] }
  0x23   :  { %124 = vmatpush.msra.mxu0 %v113_v5  ;;  %v105_v21 = vld [vmem:[#allocation7 + $0x20] sm:$0xff]  ;;  %v193_v22 = vld [vmem:[#allocation7 + $0xa8] sm:$0xff]  ;;  %v104_v23 = vld [vmem:[#allocation7 + $0x18] sm:$0xff] }
  0x24   :  { %212 = vmatpush.msra.mxu2 %v200_v8  ;;  %v192_v24 = vld [vmem:[#allocation7 + $0xa0] sm:$0xff]  ;;  %v103_v25 = vld [vmem:[#allocation7 + $0x10] sm:$0xff]  ;;  %v191_v26 = vld [vmem:[#allocation7 + $0x98] sm:$0xff] }
  0x25   :  { %125 = vmatpush.msra.mxu0 %v112_v7  ;;  %v102_v27 = vld [vmem:[#allocation7 + $0x8] sm:$0xff]  ;;  %v190_v28 = vld [vmem:[#allocation7 + $0x90] sm:$0xff]  ;;  %v101_v29 = vld [vmem:[#allocation7] sm:$0xff] }
  0x26   :  { %213 = vmatpush.msra.mxu2 %v199_v10  ;;  %v189_v30 = vld [vmem:[#allocation7 + $0x88] sm:$0xff]  ;;  %v294_v31 = vld [vmem:[#allocation7 + $0x178] sm:$0xff]  ;;  %v188_v32 = vld [vmem:[#allocation7 + $0x80] sm:$0xff] }
  0x27   :  { %126 = vmatpush.msra.mxu0 %v111_v9  ;;  %v100_v33 = vld [vmem:[#allocation6] sm:$0xff]  ;;  %v293_v34 = vld [vmem:[#allocation7 + $0x170] sm:$0xff]  ;;  %v157_v36 = vld [vmem:[#allocation10 + $0x78] sm:$0xff] }
  0x28   :  { %214 = vmatpush.msra.mxu2 %v198_v12  ;;  %v186_v35 = vld [vmem:[#allocation6 + $0x8] sm:$0xff]  ;;  %162 = vmatpush.msra.mxu1 %v157_v36  ;;  %v292_v38 = vld [vmem:[#allocation7 + $0x168] sm:$0xff]  ;;  %v246_v40 = vld [vmem:[#allocation10 + $0xf8] sm:$0xff] }
  0x29   :  { %127 = vmatpush.msra.mxu0 %v110_v11  ;;  %v156_v37 = vld [vmem:[#allocation10 + $0x70] sm:$0xff]  ;;  %v155_v39 = vld [vmem:[#allocation10 + $0x68] sm:$0xff]  ;;  %v291_v42 = vld [vmem:[#allocation7 + $0x160] sm:$0xff]  ;;  %252 = vmatpush.msra.mxu3 %v246_v40 }
  0x2a   :  { %215 = vmatpush.msra.mxu2 %v197_v14  ;;  %v245_v41 = vld [vmem:[#allocation10 + $0xf0] sm:$0xff]  ;;  %163 = vmatpush.msra.mxu1 %v156_v37  ;;  %v154_v43 = vld [vmem:[#allocation10 + $0x60] sm:$0xff]  ;;  %v244_v44 = vld [vmem:[#allocation10 + $0xe8] sm:$0xff] }
  0x2b   :  { %128 = vmatpush.msra.mxu0 %v109_v13  ;;  %v290_v45 = vld [vmem:[#allocation7 + $0x158] sm:$0xff]  ;;  %253 = vmatpush.msra.mxu3 %v245_v41  ;;  %v243_v47 = vld [vmem:[#allocation10 + $0xe0] sm:$0xff]  ;;  %v289_v48 = vld [vmem:[#allocation7 + $0x150] sm:$0xff] }
  0x2c   :  { %216 = vmatpush.msra.mxu2 %v196_v16  ;;  %164 = vmatpush.msra.mxu1 %v155_v39  ;;  %v153_v46 = vld [vmem:[#allocation10 + $0x58] sm:$0xff]  ;;  %v152_v49 = vld [vmem:[#allocation10 + $0x50] sm:$0xff]  ;;  %v288_v51 = vld [vmem:[#allocation7 + $0x148] sm:$0xff] }
  0x2d   :  { %129 = vmatpush.msra.mxu0 %v108_v15  ;;  %254 = vmatpush.msra.mxu3 %v244_v44  ;;  %v242_v50 = vld [vmem:[#allocation10 + $0xd8] sm:$0xff]  ;;  %v151_v52 = vld [vmem:[#allocation10 + $0x48] sm:$0xff]  ;;  %v241_v53 = vld [vmem:[#allocation10 + $0xd0] sm:$0xff] }
  0x2e   :  { %217 = vmatpush.msra.mxu2 %v195_v18  ;;  %165 = vmatpush.msra.mxu1 %v154_v43  ;;  %v287_v54 = vld [vmem:[#allocation7 + $0x140] sm:$0xff]  ;;  %v240_v56 = vld [vmem:[#allocation10 + $0xc8] sm:$0xff]  ;;  %v286_v57 = vld [vmem:[#allocation7 + $0x138] sm:$0xff] }
  0x2f   :  { %130 = vmatpush.msra.mxu0 %v107_v17  ;;  %255 = vmatpush.msra.mxu3 %v243_v47  ;;  %v150_v55 = vld [vmem:[#allocation10 + $0x40] sm:$0xff]  ;;  %v149_v58 = vld [vmem:[#allocation10 + $0x38] sm:$0xff]  ;;  %v285_v60 = vld [vmem:[#allocation7 + $0x130] sm:$0xff] }
  0x30   :  { %218 = vmatpush.msra.mxu2 %v194_v20  ;;  %166 = vmatpush.msra.mxu1 %v153_v46  ;;  %v239_v59 = vld [vmem:[#allocation10 + $0xc0] sm:$0xff]  ;;  %v148_v61 = vld [vmem:[#allocation10 + $0x30] sm:$0xff]  ;;  %v238_v62 = vld [vmem:[#allocation10 + $0xb8] sm:$0xff] }
  0x31   :  { %131 = vmatpush.msra.mxu0 %v106_v19  ;;  %256 = vmatpush.msra.mxu3 %v242_v50  ;;  %v284_v63 = vld [vmem:[#allocation7 + $0x128] sm:$0xff]  ;;  %v237_v1 = vld [vmem:[#allocation10 + $0xb0] sm:$0xff]  ;;  %v283_v2 = vld [vmem:[#allocation7 + $0x120] sm:$0xff] }
  0x32   :  { %219 = vmatpush.msra.mxu2 %v193_v22  ;;  %167 = vmatpush.msra.mxu1 %v152_v49  ;;  %v147_v0 = vld [vmem:[#allocation10 + $0x28] sm:$0xff]  ;;  %v146_v3 = vld [vmem:[#allocation10 + $0x20] sm:$0xff]  ;;  %v282_v5 = vld [vmem:[#allocation7 + $0x118] sm:$0xff] }
  0x33   :  { %132 = vmatpush.msra.mxu0 %v105_v21  ;;  %257 = vmatpush.msra.mxu3 %v241_v53  ;;  %v236_v4 = vld [vmem:[#allocation10 + $0xa8] sm:$0xff]  ;;  %v145_v6 = vld [vmem:[#allocation10 + $0x18] sm:$0xff]  ;;  %v235_v7 = vld [vmem:[#allocation10 + $0xa0] sm:$0xff]  ;;  %v183_v53 = vstv %s182_s3 }
  0x34   :  { %220 = vmatpush.msra.mxu2 %v192_v24  ;;  %168 = vmatpush.msra.mxu1 %v151_v52  ;;  %v281_v8 = vld [vmem:[#allocation7 + $0x110] sm:$0xff]  ;;  %v234_v10 = vld [vmem:[#allocation10 + $0x98] sm:$0xff]  ;;  %v280_v11 = vld [vmem:[#allocation7 + $0x108] sm:$0xff] }
  0x35   :  { %133 = vmatpush.msra.mxu0 %v104_v23  ;;  %258 = vmatpush.msra.mxu3 %v240_v56  ;;  %v144_v9 = vld [vmem:[#allocation10 + $0x10] sm:$0xff]  ;;  %v143_v12 = vld [vmem:[#allocation10 + $0x8] sm:$0xff]  ;;  %v279_v13 = vld [vmem:[#allocation7 + $0x100] sm:$0xff] }
  0x36   :  { %221 = vmatpush.msra.mxu2 %v191_v26  ;;  %169 = vmatpush.msra.mxu1 %v150_v55  ;;  %v277_v14 = vld [vmem:[#allocation6 + $0x10] sm:$0xff]  ;;  %v142_v15 = vld [vmem:[#allocation10] sm:$0xff]  ;;  %v335_v18 = vld [vmem:[#allocation10 + $0x168] sm:$0xff] }
  0x37   :  { %134 = vmatpush.msra.mxu0 %v103_v25  ;;  %259 = vmatpush.msra.mxu3 %v239_v59  ;;  %v337_v16 = vld [vmem:[#allocation10 + $0x178] sm:$0xff]  ;;  %v336_v17 = vld [vmem:[#allocation10 + $0x170] sm:$0xff]  ;;  %v334_v19 = vld [vmem:[#allocation10 + $0x160] sm:$0xff]  ;;  %v364_v59 = vstv %s391_s26 }
  0x38   :  { %222 = vmatpush.msra.mxu2 %v190_v28  ;;  %170 = vmatpush.msra.mxu1 %v149_v58  ;;  %v333_v20 = vld [vmem:[#allocation10 + $0x158] sm:$0xff]  ;;  %v332_v21 = vld [vmem:[#allocation10 + $0x150] sm:$0xff]  ;;  %v331_v23 = vld [vmem:[#allocation10 + $0x148] sm:$0xff] }
  0x39   :  { %135 = vmatpush.msra.mxu0 %v102_v27  ;;  %260 = vmatpush.msra.mxu3 %v238_v62  ;;  %v233_v22 = vld [vmem:[#allocation10 + $0x90] sm:$0xff]  ;;  %v232_v24 = vld [vmem:[#allocation10 + $0x88] sm:$0xff]  ;;  %v330_v25 = vld [vmem:[#allocation10 + $0x140] sm:$0xff] }
  0x3a   :  { %223 = vmatpush.msra.mxu2 %v189_v30  ;;  %171 = vmatpush.msra.mxu1 %v148_v61  ;;  %v231_v26 = vld [vmem:[#allocation10 + $0x80] sm:$0xff]  ;;  %v329_v27 = vld [vmem:[#allocation10 + $0x138] sm:$0xff]  ;;  %v328_v28 = vld [vmem:[#allocation10 + $0x130] sm:$0xff] }
  0x3b   :  { %136 = vmatpush.msra.mxu0 %v101_v29  ;;  %261 = vmatpush.msra.mxu3 %v237_v1  ;;  %v327_v29 = vld [vmem:[#allocation10 + $0x128] sm:$0xff]  ;;  %v326_v30 = vld [vmem:[#allocation10 + $0x120] sm:$0xff]  ;;  %v402_v39 = vld [vmem:[#allocation9 + $0x1] ss:$0 sm:$0xff] }
  0x3c   :  { %224 = vmatpush.msra.mxu2 %v188_v32  ;;  %137 = vmatmul.f32.vlgmr.msra.gmra.mxu0 %v100_v33  ;;  %v403_v32 = vld [vmem:[#allocation9] ss:$0 sm:$0xff]  ;;  %v324_v33 = vld [vmem:[#allocation10 + $0x110] sm:$0xff]  ;;  %v322_v37 = vld [vmem:[#allocation10 + $0x100] sm:$0xff] }
  0x3d   :  { %300 = vmatpush.msrb.mxu0 %v294_v31  ;;  %225 = vmatmul.f32.vlgmr.msra.gmra.mxu2 %v186_v35  ;;  %v325_v31 = vld [vmem:[#allocation10 + $0x118] sm:$0xff] }
  0x3e   :  { %172 = vmatpush.msra.mxu1 %v147_v0  ;;  %262 = vmatpush.msra.mxu3 %v236_v4  ;;  %v404_v43 = vld [vmem:[#allocation9 + $0x2] ss:$0 sm:$0xff]  ;;  %v406_v49 = vld [vmem:[%s627_s5 + $0x1] ss:$0 sm:$0xff] }
  0x3f   :  { %301 = vmatpush.msrb.mxu0 %v293_v34  ;;  %v323_v34 = vld [vmem:[#allocation10 + $0x108] sm:$0xff]  ;;  %v407_v55 = vld [vmem:[%s627_s5 + $0x2] ss:$0 sm:$0xff] }
  0x40   :  { %173 = vmatpush.msra.mxu1 %v146_v3  ;;  %263 = vmatpush.msra.mxu3 %v235_v7 }
  0x41   :  { %302 = vmatpush.msrb.mxu0 %v292_v38 }
  0x42   :  { %174 = vmatpush.msra.mxu1 %v145_v6  ;;  %264 = vmatpush.msra.mxu3 %v234_v10 }
  0x43   :  { %303 = vmatpush.msrb.mxu0 %v291_v42 }
  0x44   :  { %175 = vmatpush.msra.mxu1 %v144_v9  ;;  %265 = vmatpush.msra.mxu3 %v233_v22 }
  0x45   :  { %304 = vmatpush.msrb.mxu0 %v290_v45 }
  0x46   :  { %176 = vmatpush.msra.mxu1 %v143_v12  ;;  %266 = vmatpush.msra.mxu3 %v232_v24 }
  0x47   :  { %305 = vmatpush.msrb.mxu0 %v289_v48  ;;  %v405_v48 = vld [vmem:[%s627_s5] ss:$0 sm:$0xff] }
  0x48   :  { %177 = vmatpush.msra.mxu1 %v142_v15  ;;  %267 = vmatpush.msra.mxu3 %v231_v26 }
  0x49   :  { %306 = vmatpush.msrb.mxu0 %v288_v51 }
  0x4a   :  { %343 = vmatpush.msrb.mxu1 %v337_v16 }
  0x4b   :  { %307 = vmatpush.msrb.mxu0 %v287_v54  ;;  %v273_v54 = vstv %s389_s4 }
  0x4c   :  { %344 = vmatpush.msrb.mxu1 %v336_v17 }
  0x4d   :  { %308 = vmatpush.msrb.mxu0 %v286_v57 }
  0x4e   :  { %345 = vmatpush.msrb.mxu1 %v335_v18 }
  0x4f   :  { %309 = vmatpush.msrb.mxu0 %v285_v60 }
  0x50   :  { %346 = vmatpush.msrb.mxu1 %v334_v19 }
  0x51   :  { %310 = vmatpush.msrb.mxu0 %v284_v63 }
  0x52   :  { %347 = vmatpush.msrb.mxu1 %v333_v20 }
  0x53   :  { %311 = vmatpush.msrb.mxu0 %v283_v2 }
  0x54   :  { %348 = vmatpush.msrb.mxu1 %v332_v21 }
  0x55   :  { %312 = vmatpush.msrb.mxu0 %v282_v5 }
  0x56   :  { %349 = vmatpush.msrb.mxu1 %v331_v23 }
  0x57   :  { %313 = vmatpush.msrb.mxu0 %v281_v8 }
  0x58   :  { %350 = vmatpush.msrb.mxu1 %v330_v25 }
  0x59   :  { %314 = vmatpush.msrb.mxu0 %v280_v11 }
  0x5a   :  { %351 = vmatpush.msrb.mxu1 %v329_v27 }
  0x5b   :  { %315 = vmatpush.msrb.mxu0 %v279_v13 }
  0x5c   :  { %316 = vmatmul.f32.vlgmr.msrb.gmra.mxu0 %v277_v14  ;;  %352 = vmatpush.msrb.mxu1 %v328_v28 }
  0x5e   :  { %353 = vmatpush.msrb.mxu1 %v327_v29 }
  0x60   :  { %354 = vmatpush.msrb.mxu1 %v326_v30 }
  0x62   :  { %355 = vmatpush.msrb.mxu1 %v325_v31 }
  0x64   :  { %356 = vmatpush.msrb.mxu1 %v324_v33 }
  0x66   :  { %357 = vmatpush.msrb.mxu1 %v323_v34 }
  0x68   :  { %358 = vmatpush.msrb.mxu1 %v322_v37 }
  0xb9   :  { %v138_v35 = vpop.f32.mrf.mxu0 }
  0xba   :  { %v139_v36 = vadd.f32 %v403_v32, %v138_v35 }
  0xbc   :  { %v141_v38 = vmax.f32 %v139_v36, 0.0 }
  0xbe   :  { %178 = vmatmul.f32.vlgmr.msra.gmra.mxu1 %v141_v38 }
  0xc0   :  { %v226_v40 = vpop.f32.mrf.mxu2 }
  0xc1   :  { %v227_v41 = vadd.f32 %v402_v39, %v226_v40 }
  0xc3   :  { %v229_v42 = vmax.f32 %v227_v41, 0.0 }
  0xc5   :  { %268 = vmatmul.f32.vlgmr.msra.gmra.mxu3 %v229_v42 }
  0xd9   :  { %v317_v44 = vpop.f32.mrf.mxu0 }
  0xda   :  { %v318_v45 = vadd.f32 %v404_v43, %v317_v44 }
  0xdc   :  { %v320_v46 = vmax.f32 %v318_v45, 0.0 }
  0xde   :  { %359 = vmatmul.f32.vlgmr.msrb.gmra.mxu1 %v320_v46 }
 0x13b   :  { %v179_v47 = vpop.f32.mrf.mxu1 }
 0x13c   :  { %v180_v51 = vadd.f32 %v405_v48, %v179_v47 }
 0x13e   :  { %v184_v56 = vmul.f32 %v183_v53, %v180_v51 }
 0x148   :  { %v269_v50 = vpop.f32.mrf.mxu3 }
 0x149   :  { %v270_v52 = vadd.f32 %v406_v49, %v269_v50 }
 0x14b   :  { %v274_v57 = vmul.f32 %v273_v54, %v270_v52 }
 0x14d   :  { %v275_v62 = vadd.f32 %v274_v57, %v184_v56 }
 0x15b   :  { %v360_v58 = vpop.f32.mrf.mxu1 }
 0x15c   :  { %v361_v60 = vadd.f32 %v407_v55, %v360_v58 }
 0x15e   :  { %v365_v61 = vmul.f32 %v364_v59, %v361_v60 }
 0x160   :  { %v366_v63 = vadd.f32 %v365_v61, %v275_v62 }
 0x162   :  { %367 = vst [vmem:[#allocation12] sm:$0xff] %v366_v63 }
 0x163   :  { %378 = dma.vmem_to_hbm [thread:$0]  %s374_s30, 128, %s376_s9, [#allocation4]  }
 0x164   :  { %548 = dma.done.wait [#allocation4], 128  }
 0x165   :  { %549 = vsyncadd [#allocation4], 4294967168 }
 0x166   :  { %383 = vsyncpa [#allocation3], 1 }
 0x167   :  { %384 = vsyncpa [#allocation8], 1 }
 0x168   :  { %385 = vsyncpa [#allocation11], 1 }
 0x169   :  { %386 = vsyncpa [#allocation4], 1 }
 0x16a   :  { %387 = vsyncpa [#allocation5], 1 }

</bundles_post_ra>
